<compile_context>
chip_gen: v5e
topology: v5e:2x2
jax: 0.10.0
libtpu: 0.0.40
codegen_flags: <defaults>
</compile_context>

<pallas_src>
import math
from functools import partial

import jax
import jax.numpy as jnp
from jax.experimental import pallas as pl
from jax.experimental.pallas import tpu as pltpu

ACT_DTYPE = jnp.bfloat16
SUBLANE_PACK = 16   # bf16 sublane packing; in-kernel row offsets stay multiples of this


def _round_up(x, m):
    return ((x + m - 1) // m) * m


# -----------------------------------------------------------------------------
# Pallas kernel: per-image conv-as-matmul with in-kernel H-tap accumulation and
# fused BN scale/bias (+ ReLU) epilogue.
# -----------------------------------------------------------------------------
def _conv_kernel(x_ref, w_ref, s_ref, b_ref, o_ref, *, kh, step, m, relu):
    # x_ref: (rows, Ceff)  activation with the kw W-taps folded into Ceff
    # w_ref: (kh, Ceff, tn) filter matrix per H-direction tap
    # s_ref/b_ref: (1, tn)  folded BN scale / bias (f32)
    # o_ref: (m, tn)        output tile, m = Ho*Wo
    tn = o_ref.shape[-1]
    acc = jnp.zeros((m, tn), jnp.float32)
    for di in range(kh):                       # static, <=3 taps, fully unrolled
        a = x_ref[pl.ds(di * step, m), :]      # aligned static row slice
        acc = acc + jnp.dot(a, w_ref[di], preferred_element_type=jnp.float32)
    r = acc * s_ref[...] + b_ref[...]
    if relu:
        r = jnp.maximum(r, 0.0)
    o_ref[...] = r.astype(o_ref.dtype)


def _conv_matmul(g, w_eff, scale, bias, kh, step, m, relu, tn):
    n, rows, ceff = g.shape
    cout = w_eff.shape[-1]
    return pl.pallas_call(
        partial(_conv_kernel, kh=kh, step=step, m=m, relu=relu),
        out_shape=jax.ShapeDtypeStruct((n, m, cout), ACT_DTYPE),
        grid_spec=pltpu.PrefetchScalarGridSpec(
            num_scalar_prefetch=0,
            grid=(n, cout // tn),
            in_specs=[
                pl.BlockSpec((None, rows, ceff), lambda b, j: (b, 0, 0)),
                pl.BlockSpec((kh, ceff, tn), lambda b, j: (0, 0, j)),
                pl.BlockSpec((1, tn), lambda b, j: (0, j)),
                pl.BlockSpec((1, tn), lambda b, j: (0, j)),
            ],
            out_specs=pl.BlockSpec((None, m, tn), lambda b, j: (b, 0, j)),
        ),
        compiler_params=pltpu.CompilerParams(
            dimension_semantics=("parallel", "parallel"),
            vmem_limit_bytes=48 * 1024 * 1024),
    )(g, w_eff, scale, bias)


# -----------------------------------------------------------------------------
# Conv wrapper: builds the (at most kw-fold) gathered LHS and calls the kernel.
# -----------------------------------------------------------------------------
def conv2d_fused(x, layer):
    # x: (N, H, W, Cin) bf16 NHWC
    N, H, W, _ = x.shape
    kh, kw = layer['ksize']
    sh, sw = layer['stride']
    ph, pw = layer['padding']
    dh, dw = layer['dilation']
    cout, tn = layer['cout'], layer['tn']
    Ho = (H + 2 * ph - dh * (kh - 1) - 1) // sh + 1
    Wo = (W + 2 * pw - dw * (kw - 1) - 1) // sw + 1
    xp = jnp.pad(x, ((0, 0), (ph, ph), (pw, pw), (0, 0))) if (ph or pw) else x

    use_h_loop = (sh == 1 and sw == 1 and
                  (kh == 1 or (dh * Wo) % SUBLANE_PACK == 0))
    if use_h_loop:
        # fold only the kw W-taps into channels; kh row taps handled in-kernel
        if kw == 1:
            g4 = xp                                        # incl. pure 1x1 fast path
        else:
            g4 = jnp.concatenate(
                [xp[:, :, j * dw:j * dw + Wo, :] for j in range(kw)], axis=-1)
        kh_eff, step = kh, dh * Wo
        w_eff, kpad = layer['w_h'], layer['kpad_h']
    else:
        # strided or tiny-feature-map conv: full tap gather (negligible here)
        sls = [xp[:, i * dh:i * dh + (Ho - 1) * sh + 1:sh,
                  j * dw:j * dw + (Wo - 1) * sw + 1:sw, :]
               for i in range(kh) for j in range(kw)]
        g4 = sls[0] if len(sls) == 1 else jnp.concatenate(sls, axis=-1)
        kh_eff, step = 1, 0
        w_eff, kpad = layer['w_f'], layer['kpad_f']

    g = g4.reshape(N, -1, g4.shape[-1])
    m = Ho * Wo
    m_eff = m
    if m < SUBLANE_PACK and kh_eff == 1 and g.shape[1] == m:
        # tiny 1x1/2x2 feature maps: pad the M axis so the MXU tile is well formed
        m_eff = SUBLANE_PACK
        g = jnp.pad(g, ((0, 0), (0, m_eff - m), (0, 0)))
    if kpad:
        g = jnp.pad(g, ((0, 0), (0, 0), (0, kpad)))

    out = _conv_matmul(g, w_eff, layer['scale'], layer['bias'],
                       kh_eff, step, m_eff, layer['relu'], tn)
    if m_eff != m:
        out = out[:, :m, :]
    return out.reshape(N, Ho, Wo, cout)


# -----------------------------------------------------------------------------
# Pooling (glue ops in plain JAX; negligible FLOPs)
# -----------------------------------------------------------------------------
def maxpool_2x2(x, ceil_mode=False):
    N, H, W, C = x.shape
    if ceil_mode:
        Hp, Wp = _round_up(H, 2), _round_up(W, 2)
        if Hp != H or Wp != W:
            x = jnp.pad(x, ((0, 0), (0, Hp - H), (0, Wp - W), (0, 0)),
                        constant_values=-jnp.inf)
    else:
        x = x[:, : (H // 2) * 2, : (W // 2) * 2, :]
    N, H, W, C = x.shape
    return x.reshape(N, H // 2, 2, W // 2, 2, C).max(axis=(2, 4))


def maxpool_3x3_s1_p1(x):
    N, H, W, C = x.shape
    xp = jnp.pad(x, ((0, 0), (1, 1), (1, 1), (0, 0)), constant_values=-jnp.inf)
    sls = [xp[:, i:i + H, j:j + W, :] for i in range(3) for j in range(3)]
    return jnp.max(jnp.stack(sls, axis=0), axis=0)


# -----------------------------------------------------------------------------
# Parameter construction (deterministic, PRNG-seeded; all weight-side prep is
# done here, once, not per forward call)
# -----------------------------------------------------------------------------
class KeyGen:
    def __init__(self, seed):
        self.key = jax.random.PRNGKey(seed)

    def __call__(self):
        self.key, k = jax.random.split(self.key)
        return k


def _conv_weight(kg, kh, kw, cin, cout):
    fan_in = kh * kw * cin
    return jax.random.normal(kg(), (kh, kw, cin, cout), jnp.float32) * math.sqrt(2.0 / fan_in)


def _bn_fold(kg, cout):
    gamma = 1.0 + 0.1 * jax.random.normal(kg(), (cout,), jnp.float32)
    beta = 0.1 * jax.random.normal(kg(), (cout,), jnp.float32)
    mean = 0.1 * jax.random.normal(kg(), (cout,), jnp.float32)
    var = jax.random.uniform(kg(), (cout,), jnp.float32, minval=0.5, maxval=1.5)
    scale = gamma / jnp.sqrt(var + 1e-5)
    bias = beta - mean * scale
    return scale, bias


def _finalize_conv(w, scale, bias, stride, padding, dilation, relu):
    kh, kw, cin, cout = w.shape
    w = w.astype(ACT_DTYPE)
    # variant A: kh kept as a leading tap axis (in-kernel H-tap loop)
    ceff_h = kw * cin
    kpad_h = 128 - ceff_h if ceff_h < 128 else 0
    w_h = w.reshape(kh, ceff_h, cout)
    if kpad_h:
        w_h = jnp.pad(w_h, ((0, 0), (0, kpad_h), (0, 0)))
    # variant B: fully flattened taps (pre-gathered LHS fallback)
    ceff_f = kh * kw * cin
    kpad_f = 128 - ceff_f if ceff_f < 128 else 0
    w_f = w.reshape(1, ceff_f, cout)
    if kpad_f:
        w_f = jnp.pad(w_f, ((0, 0), (0, kpad_f), (0, 0)))
    tn = 256 if (cout > 256 and cout % 256 == 0) else cout
    return dict(kind='conv',
                w_h=w_h, kpad_h=kpad_h, w_f=w_f, kpad_f=kpad_f,
                scale=jnp.asarray(scale, jnp.float32).reshape(1, cout),
                bias=jnp.asarray(bias, jnp.float32).reshape(1, cout),
                ksize=(kh, kw), stride=tuple(stride), padding=tuple(padding),
                dilation=tuple(dilation), relu=relu, cout=cout, tn=tn)


def make_basic_conv(kg, cin, cout, ksize, stride=(1, 1), padding=(0, 0),
                    dilation=(1, 1), relu=True):
    """BasicConv: conv (no bias) + folded inference BatchNorm + optional ReLU."""
    w = _conv_weight(kg, ksize[0], ksize[1], cin, cout)
    scale, bias = _bn_fold(kg, cout)
    return _finalize_conv(w, scale, bias, stride, padding, dilation, relu)


def make_plain_conv(kg, cin, cout, ksize, stride=(1, 1), padding=(0, 0),
                    dilation=(1, 1), relu=False):
    """Plain nn.Conv2d (with bias), no BN.  relu=True fuses a following nn.ReLU."""
    w = _conv_weight(kg, ksize[0], ksize[1], cin, cout)
    b = 0.01 * jax.random.normal(kg(), (cout,), jnp.float32)
    return _finalize_conv(w, jnp.ones((cout,), jnp.float32), b,
                          stride, padding, dilation, relu)


def make_merged_basic_conv_1x1(kg, cin, couts):
    """Several BasicConv(cin, c, 1x1, BN, ReLU) on one shared input, fused along Cout."""
    ws, ss, bs = [], [], []
    for c in couts:
        ws.append(_conv_weight(kg, 1, 1, cin, c))
        s, b = _bn_fold(kg, c)
        ss.append(s)
        bs.append(b)
    layer = _finalize_conv(jnp.concatenate(ws, axis=-1),
                           jnp.concatenate(ss), jnp.concatenate(bs),
                           (1, 1), (0, 0), (1, 1), True)
    layer['splits'] = tuple(couts)
    return layer


def make_merged_head(kg, cin, c_loc, c_conf):
    """loc and conf 3x3 head convs on the same source, fused along Cout."""
    w = jnp.concatenate([_conv_weight(kg, 3, 3, cin, c_loc),
                         _conv_weight(kg, 3, 3, cin, c_conf)], axis=-1)
    b = 0.01 * jax.random.normal(kg(), (c_loc + c_conf,), jnp.float32)
    layer = _finalize_conv(w, jnp.ones((c_loc + c_conf,), jnp.float32), b,
                           (1, 1), (1, 1), (1, 1), False)
    layer['split_loc'] = c_loc
    return layer


BASE_CFG_300 = [64, 64, 'M', 128, 128, 'M', 256, 256, 256, 'C',
                512, 512, 512, 'M', 512, 512, 512]
MBOX_300 = [6, 6, 6, 6, 4, 4]


def build_vgg(kg, cfg, in_ch):
    layers = []
    c = in_ch
    for v in cfg:
        if v == 'M':
            layers.append({'kind': 'pool2', 'ceil': False})
        elif v == 'C':
            layers.append({'kind': 'pool2', 'ceil': True})
        else:
            # conv + (separate nn.ReLU) -> ReLU fused in kernel, identity keeps index
            layers.append(make_plain_conv(kg, c, v, (3, 3), padding=(1, 1), relu=True))
            layers.append({'kind': 'id'})
            c = v
    layers.append({'kind': 'pool3s1'})                                            # pool5
    layers.append(make_plain_conv(kg, 512, 1024, (3, 3), padding=(6, 6),
                                  dilation=(6, 6), relu=True))                    # conv6
    layers.append({'kind': 'id'})
    layers.append(make_plain_conv(kg, 1024, 1024, (1, 1), relu=True))             # conv7
    layers.append({'kind': 'id'})
    return layers


def build_rfb_a(kg, in_planes, out_planes, stride=1, scale=1.0):
    inter = in_planes // 4
    s = (stride, stride)
    # the four branch-entry 1x1 BasicConvs share the input -> fused into one call
    entry = make_merged_basic_conv_1x1(kg, in_planes,
                                       [inter, inter, inter, inter // 2])
    b0 = [make_basic_conv(kg, inter, inter, (3, 3), padding=(1, 1), relu=False)]
    b1 = [make_basic_conv(kg, inter, inter, (3, 1), padding=(1, 0)),
          make_basic_conv(kg, inter, inter, (3, 3), padding=(3, 3), dilation=(3, 3), relu=False)]
    b2 = [make_basic_conv(kg, inter, inter, (1, 3), stride=s, padding=(0, 1)),
          make_basic_conv(kg, inter, inter, (3, 3), padding=(3, 3), dilation=(3, 3), relu=False)]
    b3 = [make_basic_conv(kg, inter // 2, (inter // 4) * 3, (1, 3), padding=(0, 1)),
          make_basic_conv(kg, (inter // 4) * 3, inter, (3, 1), stride=s, padding=(1, 0)),
          make_basic_conv(kg, inter, inter, (3, 3), padding=(5, 5), dilation=(5, 5), relu=False)]
    conv_linear = make_basic_conv(kg, 4 * inter, out_planes, (1, 1), relu=False)
    shortcut = make_basic_conv(kg, in_planes, out_planes, (1, 1), stride=s, relu=False)
    return {'entry': entry, 'tails': [b0, b1, b2, b3], 'linear': conv_linear,
            'short': shortcut, 'scale': scale}


def build_extras(kg):
    # TODO(synk): the original add_extras() uses BasicRFB blocks (class not provided);
    # BasicConv stand-ins with the same channel/stride progression as
    # extras['300'] = [1024, 'S', 512, 'S', 256].
    return [
        make_basic_conv(kg, 1024, 1024, (3, 3), padding=(1, 1)),
        make_basic_conv(kg, 1024, 512, (3, 3), stride=(2, 2), padding=(1, 1)),
        make_basic_conv(kg, 512, 256, (3, 3), stride=(2, 2), padding=(1, 1)),
        make_basic_conv(kg, 256, 128, (1, 1)),
        make_basic_conv(kg, 128, 256, (3, 3), stride=(2, 2), padding=(1, 1)),
        make_basic_conv(kg, 256, 128, (1, 1)),
        make_basic_conv(kg, 128, 256, (3, 3), stride=(2, 2), padding=(1, 1)),
    ]


def build_heads(kg, source_channels, mbox, num_classes):
    return [make_merged_head(kg, ci, m * 4, m * num_classes)
            for ci, m in zip(source_channels, mbox)]


def build_rfbnet(kg, num_classes=21):
    base = build_vgg(kg, BASE_CFG_300, 3)
    norm = build_rfb_a(kg, 512, 512, stride=1, scale=1.0)
    extras = build_extras(kg)
    source_channels = [512, 1024, 512, 256, 256, 256]
    heads = build_heads(kg, source_channels, MBOX_300, num_classes)
    return dict(base=base, norm=norm, extras=extras, heads=heads,
                indicator=3, num_classes=num_classes)


# -----------------------------------------------------------------------------
# Forward
# -----------------------------------------------------------------------------
def apply_layer(layer, x):
    k = layer['kind']
    if k == 'conv':
        return conv2d_fused(x, layer)
    if k == 'pool2':
        return maxpool_2x2(x, ceil_mode=layer['ceil'])
    if k == 'pool3s1':
        return maxpool_3x3_s1_p1(x)
    if k == 'id':
        return x
    raise ValueError(k)


def apply_rfb_a(params, x):
    entry_out = apply_layer(params['entry'], x)
    outs, off = [], 0
    for branch, c in zip(params['tails'], params['entry']['splits']):
        y = entry_out[..., off:off + c]
        off += c
        for layer in branch:
            y = apply_layer(layer, y)
        outs.append(y)
    out = jnp.concatenate(outs, axis=-1)          # channel concat (axis 1 in NCHW)
    out = apply_layer(params['linear'], out)
    short = apply_layer(params['short'], x)
    out = out * params['scale'] + short
    return jnp.maximum(out, 0.0)


def rfbnet_forward(params, x_nchw):
    num_classes = params['num_classes']
    x = jnp.transpose(x_nchw, (0, 2, 3, 1)).astype(ACT_DTYPE)   # NCHW -> NHWC, bf16
    sources, loc, conf = [], [], []

    for k in range(23):                            # through conv4_3 + ReLU
        x = apply_layer(params['base'][k], x)
    s = apply_rfb_a(params['norm'], x)
    sources.append(s)
    for k in range(23, len(params['base'])):       # through conv7 + ReLU
        x = apply_layer(params['base'][k], x)

    for k, v in enumerate(params['extras']):
        x = apply_layer(v, x)
        if k < params['indicator'] or k % 2 == 0:
            sources.append(x)

    for src, head in zip(sources, params['heads']):
        o = apply_layer(head, src)                 # fused loc+conf, already NHWC
        nl = head['split_loc']
        lo, co = o[..., :nl], o[..., nl:]
        loc.append(lo.reshape(lo.shape[0], -1))
        conf.append(co.reshape(co.shape[0], -1))

    loc = jnp.concatenate(loc, axis=1).astype(jnp.float32)
    conf = jnp.concatenate(conf, axis=1).astype(jnp.float32)
    # phase == 'train'
    return (loc.reshape(loc.shape[0], -1, 4),
            conf.reshape(conf.shape[0], -1, num_classes))


# -----------------------------------------------------------------------------
# Self-check: fused Pallas conv vs lax.conv_general_dilated on the same bf16
# operands (f32 accumulation), covering all code paths of the wrapper.
# -----------------------------------------------------------------------------
def _reference_conv(x, w, scale, bias, stride, padding, dilation, relu):
    out = jax.lax.conv_general_dilated(
        x, w, window_strides=stride,
        padding=[(padding[0], padding[0]), (padding[1], padding[1])],
        rhs_dilation=dilation,
        dimension_numbers=('NHWC', 'HWIO', 'NHWC'),
        preferred_element_type=jnp.float32)
    out = out * scale.reshape(-1) + bias.reshape(-1)
    if relu:
        out = jnp.maximum(out, 0.0)
    return out


def _self_test():
    kg = KeyGen(7)
    x = jax.random.normal(kg(), (2, 16, 16, 32), jnp.float32).astype(ACT_DTYPE)
    cases = [
        ((3, 3), (1, 1), (1, 1), (1, 1), True),    # in-kernel H-tap path (+K pad)
        ((3, 3), (2, 2), (1, 1), (1, 1), True),    # strided -> full gather fallback
        ((1, 1), (1, 1), (0, 0), (1, 1), False),   # pure 1x1 fast path
        ((3, 3), (1, 1), (3, 3), (3, 3), False),   # dilated, in-kernel H-tap path
    ]
    for ksize, stride, padding, dilation, relu in cases:
        w = _conv_weight(kg, ksize[0], ksize[1], 32, 48)
        scale, bias = _bn_fold(kg, 48)
        layer = _finalize_conv(w, scale, bias, stride, padding, dilation, relu)
        got = conv2d_fused(x, layer).astype(jnp.float32)
        want = _reference_conv(x, w.astype(ACT_DTYPE), layer['scale'],
                               layer['bias'], stride, padding, dilation, relu)
        err = jnp.max(jnp.abs(got - want)) / (jnp.max(jnp.abs(want)) + 1e-6)
        assert float(err) < 5e-2, (ksize, stride, padding, dilation, float(err))


# -----------------------------------------------------------------------------
if __name__ == "__main__":
    NUM_CLASSES = 21

    _self_test()

    kg = KeyGen(42)
    params = build_rfbnet(kg, num_classes=NUM_CLASSES)

    # Small input (batch=2, 3 channels, 64x64) consistent with the 300-config
    # structure; feature maps: 8,4,2,1,1,1 -> 518 priors with mbox [6,6,6,6,4,4].
    x = jax.random.normal(jax.random.PRNGKey(0), (2, 3, 64, 64), jnp.float32)

    loc, conf = rfbnet_forward(params, x)
    loc, conf = jax.block_until_ready((loc, conf))

    expected_priors = 8 * 8 * 6 + 4 * 4 * 6 + 2 * 2 * 6 + 1 * 6 + 1 * 4 + 1 * 4  # 518
    assert loc.shape == (2, expected_priors, 4), loc.shape
    assert conf.shape == (2, expected_priors, NUM_CLASSES), conf.shape
    assert bool(jnp.isfinite(loc).all()) and bool(jnp.isfinite(conf).all())
    print("KERNEL_OK")
</pallas_src>

<mosaic_0001>
module attributes {stable_mosaic.version = 11 : i64} {
  func.func @_conv_kernel(%arg0: i32, %arg1: i32, %arg2: memref<1x288x128xbf16, #tpu.memory_space<vmem>>, %arg3: memref<3x128x48xbf16, #tpu.memory_space<vmem>>, %arg4: memref<1x48xf32, #tpu.memory_space<vmem>>, %arg5: memref<1x48xf32, #tpu.memory_space<vmem>>, %arg6: memref<1x256x48xbf16, #tpu.memory_space<vmem>>) attributes {dimension_semantics = [#tpu.dimension_semantics<parallel>, #tpu.dimension_semantics<parallel>], iteration_bounds = array<i64: 2, 1>, scalar_prefetch = 0 : i64, scratch_operands = 0 : i64, tpu.core_type = #tpu.core_type<tc>, window_params = [{transform_indices = @transform_0, window_bounds = array<i64: 1, 288, 128>}, {transform_indices = @transform_1, window_bounds = array<i64: 3, 128, 48>}, {transform_indices = @transform_2, window_bounds = array<i64: 1, 48>}, {transform_indices = @transform_3, window_bounds = array<i64: 1, 48>}, {transform_indices = @transform_4, window_bounds = array<i64: 1, 256, 48>}]} {
    %cst = arith.constant 0.000000e+00 : f32
    %0 = vector.broadcast %cst : f32 to vector<256x48xf32>
    %c0 = arith.constant 0 : index
    %c0_0 = arith.constant 0 : index
    %c0_1 = arith.constant 0 : index
    %1 = vector.load %arg2[%c0, %c0_0, %c0_1] : memref<1x288x128xbf16, #tpu.memory_space<vmem>>, vector<1x256x128xbf16>
    %2 = vector.shape_cast %1 : vector<1x256x128xbf16> to vector<256x128xbf16>
    %c0_2 = arith.constant 0 : index
    %c0_3 = arith.constant 0 : index
    %c0_4 = arith.constant 0 : index
    %3 = vector.load %arg3[%c0_2, %c0_3, %c0_4] : memref<3x128x48xbf16, #tpu.memory_space<vmem>>, vector<1x128x48xbf16>
    %4 = vector.shape_cast %3 : vector<1x128x48xbf16> to vector<128x48xbf16>
    %cst_5 = arith.constant dense<0.000000e+00> : vector<256x48xf32>
    %5 = tpu.matmul %2, %4, %cst_5 {dimension_numbers = #tpu.dot_dimension_numbers<[1], [0], [0], [1], [0, 0, 1, 1], [], []>} : vector<256x128xbf16>, vector<128x48xbf16>, vector<256x48xf32> -> vector<256x48xf32>
    %6 = arith.addf %0, %5 : vector<256x48xf32>
    %c0_6 = arith.constant 0 : index
    %c16 = arith.constant 16 : index
    %c0_7 = arith.constant 0 : index
    %7 = vector.load %arg2[%c0_6, %c16, %c0_7] : memref<1x288x128xbf16, #tpu.memory_space<vmem>>, vector<1x256x128xbf16>
    %8 = vector.shape_cast %7 : vector<1x256x128xbf16> to vector<256x128xbf16>
    %c1 = arith.constant 1 : index
    %c0_8 = arith.constant 0 : index
    %c0_9 = arith.constant 0 : index
    %9 = vector.load %arg3[%c1, %c0_8, %c0_9] : memref<3x128x48xbf16, #tpu.memory_space<vmem>>, vector<1x128x48xbf16>
    %10 = vector.shape_cast %9 : vector<1x128x48xbf16> to vector<128x48xbf16>
    %cst_10 = arith.constant dense<0.000000e+00> : vector<256x48xf32>
    %11 = tpu.matmul %8, %10, %cst_10 {dimension_numbers = #tpu.dot_dimension_numbers<[1], [0], [0], [1], [0, 0, 1, 1], [], []>} : vector<256x128xbf16>, vector<128x48xbf16>, vector<256x48xf32> -> vector<256x48xf32>
    %12 = arith.addf %6, %11 : vector<256x48xf32>
    %c0_11 = arith.constant 0 : index
    %c32 = arith.constant 32 : index
    %c0_12 = arith.constant 0 : index
    %13 = vector.load %arg2[%c0_11, %c32, %c0_12] : memref<1x288x128xbf16, #tpu.memory_space<vmem>>, vector<1x256x128xbf16>
    %14 = vector.shape_cast %13 : vector<1x256x128xbf16> to vector<256x128xbf16>
    %c2 = arith.constant 2 : index
    %c0_13 = arith.constant 0 : index
    %c0_14 = arith.constant 0 : index
    %15 = vector.load %arg3[%c2, %c0_13, %c0_14] : memref<3x128x48xbf16, #tpu.memory_space<vmem>>, vector<1x128x48xbf16>
    %16 = vector.shape_cast %15 : vector<1x128x48xbf16> to vector<128x48xbf16>
    %cst_15 = arith.constant dense<0.000000e+00> : vector<256x48xf32>
    %17 = tpu.matmul %14, %16, %cst_15 {dimension_numbers = #tpu.dot_dimension_numbers<[1], [0], [0], [1], [0, 0, 1, 1], [], []>} : vector<256x128xbf16>, vector<128x48xbf16>, vector<256x48xf32> -> vector<256x48xf32>
    %18 = arith.addf %12, %17 : vector<256x48xf32>
    %c0_16 = arith.constant 0 : index
    %c0_17 = arith.constant 0 : index
    %19 = vector.load %arg4[%c0_16, %c0_17] : memref<1x48xf32, #tpu.memory_space<vmem>>, vector<1x48xf32>
    %20 = vector.broadcast %19 : vector<1x48xf32> to vector<256x48xf32>
    %21 = arith.mulf %18, %20 : vector<256x48xf32>
    %c0_18 = arith.constant 0 : index
    %c0_19 = arith.constant 0 : index
    %22 = vector.load %arg5[%c0_18, %c0_19] : memref<1x48xf32, #tpu.memory_space<vmem>>, vector<1x48xf32>
    %23 = vector.broadcast %22 : vector<1x48xf32> to vector<256x48xf32>
    %24 = arith.addf %21, %23 : vector<256x48xf32>
    %cst_20 = arith.constant 0.000000e+00 : f32
    %25 = vector.broadcast %cst_20 : f32 to vector<256x48xf32>
    %26 = arith.maximumf %24, %25 : vector<256x48xf32>
    %27 = arith.truncf %26 : vector<256x48xf32> to vector<256x48xbf16>
    %c0_21 = arith.constant 0 : index
    %c0_22 = arith.constant 0 : index
    %c0_23 = arith.constant 0 : index
    %28 = vector.load %arg6[%c0_21, %c0_22, %c0_23] : memref<1x256x48xbf16, #tpu.memory_space<vmem>>, vector<1x256x48xbf16>
    %29 = vector.shape_cast %28 : vector<1x256x48xbf16> to vector<256x48xbf16>
    %30 = vector.shape_cast %27 : vector<256x48xbf16> to vector<1x256x48xbf16>
    tpu.vector_store %arg6[%c0_21, %c0_22, %c0_23], %30 {strides = array<i32>} : memref<1x256x48xbf16, #tpu.memory_space<vmem>>, vector<1x256x48xbf16>,
    return
  }
  func.func @transform_0(%arg0: i32, %arg1: i32) -> (i32, i32, i32) {
    %c0_i32 = arith.constant 0 : i32
    %c0_i32_0 = arith.constant 0 : i32
    %c0_i32_1 = arith.constant 0 : i32
    return %arg0, %c0_i32, %c0_i32_0 : i32, i32, i32
  }
  func.func @transform_1(%arg0: i32, %arg1: i32) -> (i32, i32, i32) {
    %c0_i32 = arith.constant 0 : i32
    %c0_i32_0 = arith.constant 0 : i32
    %c0_i32_1 = arith.constant 0 : i32
    return %c0_i32, %c0_i32_0, %arg1 : i32, i32, i32
  }
  func.func @transform_2(%arg0: i32, %arg1: i32) -> (i32, i32) {
    %c0_i32 = arith.constant 0 : i32
    %c0_i32_0 = arith.constant 0 : i32
    return %c0_i32, %arg1 : i32, i32
  }
  func.func @transform_3(%arg0: i32, %arg1: i32) -> (i32, i32) {
    %c0_i32 = arith.constant 0 : i32
    %c0_i32_0 = arith.constant 0 : i32
    return %c0_i32, %arg1 : i32, i32
  }
  func.func @transform_4(%arg0: i32, %arg1: i32) -> (i32, i32, i32) {
    %c0_i32 = arith.constant 0 : i32
    %c0_i32_0 = arith.constant 0 : i32
    return %arg0, %c0_i32, %arg1 : i32, i32, i32
  }
}

</mosaic_0001>

<bundles_post_ra>
// kernel: tpu_custom_call.1
= control target key start
LH: loop header
LB: loop body
LE: loop exit
PB: predicated region body
PF: predicated region fallthrough
CT: control target
= control target key end

     0   :  { %9 = vsyncpa [#allocation3], 0  ;;  %s2262_s0 = inlined_call_operand.hbm [shape: bf16[2,288,128], index: 0, kind: input, shape index: {}]   ;;  %s2263_s1 = inlined_call_operand.vmem [shape: bf16[3,128,48], index: 1, kind: input, shape index: {}]   ;;  %s2264_s2 = inlined_call_operand.vmem [shape: f32[1,48], index: 2, kind: input, shape index: {}]   ;;  %s2265_s3 = inlined_call_operand.vmem [shape: f32[1,48], index: 3, kind: input, shape index: {}]   ;;  %s2266_s4 = inlined_call_operand.vmem [shape: bf16[2,256,48], index: 4, kind: output, shape index: {}]  }
   0x1   :  { %11 = vsyncpa [#allocation3 + $0x1], 0  ;;  %s1865_s15 = smov 0   ;;  %s1867_s16 = smov 0  }
   0x2   :  { %s1869_s17 = smov 0   ;;  %s1871_s18 = smov 0  }
   0x3   :  { %s1873_s19 = smov 0   ;;  %s1875_s20 = smov 0  }
   0x4 LB: > { %s1339_s21 = sadd.s32 4294967295, %s1836_s20   ;;  %s29_s22 = sadd.s32 1, %s1832_s19  ;;  %s1836_s20 = sphi %s1875_s20, %s17_s20   ;;  %s1832_s19 = sphi %s1873_s19, %s2272_s19   ;;  %s1828_s18 = sphi %s1871_s18, %s2271_s18   ;;  %s1824_s17 = sphi %s1869_s17, %s2270_s17   ;;  %s1820_s16 = sphi %s1867_s16, %s2269_s16   ;;  %s1816_s15 = sphi %s1865_s15, %s2268_s15  }
   0x5   : > { %p31_p0 = scmp.ge.s32.totalorder %s29_s22, 2  ;;  %s36_s23 = sadd.s32 1, %s1824_s17 }
   0x6   : > { %p43_p1 = scmp.ne.s32.totalorder %s1824_s17, %s1820_s16  ;;  %p44_p2 = scmp.eq.s32.totalorder %s1836_s20, 0 }
   0x7   : > { %s2274_s22 = smov (%p31_p0, %s29_s22), 0  ;;  %p49_p4 = scmp.ne.s32.totalorder %s1820_s16, %s1816_s15 }
   0x8   : > { %p45_p3 = por %p44_p2, %p43_p1  ;;  %s33_s24 = ssub.s32 %s1832_s19, %s2274_s22 }
   0x9   : > { %p50_p5 = scmp.eq.s32.totalorder %s1339_s21, 0  ;;  %p34_p6 = scmp.eq.s32.totalorder %s33_s24, 0 }
   0xa   : > { %p1703_p8 = scmp.lt.s32.totalorder %s1836_s20, 2  ;;  %s198_s27 = sand.u32 1, %s1824_s17  }
   0xb   : > { %p1904_p7 = por %p50_p5, %p49_p4  ;;  %s1695_s28 = smul.u32 144, %s1832_s19 }
   0xc   : > { %s1910_s26 = scalar_select %p34_p6, %s1824_s17, %s36_s23  }
   0xd   : > { %s1694_s29 = smul.u32 144, %s198_s27  ;;  %s207_s6 = scalar_lea.hbm %s2262_s0, %s1695_s28 }
   0xe   : > { %p1700_p9 = pnand %p1703_p8, %p45_p3  ;;  %s208_s7 = sshll.u32 %s207_s6, 4  ;;  %s209_s7 = int_to_ptr.hbm [resolvable:$true] %s208_s7 }
   0xf   : > { %s202_s8 = scalar_lea.vmem [#allocation2], %s1694_s29  ;;  %s199_s10 = scalar_lea.sflag [#allocation3], %s198_s27 }
  0x10   : > { %s210_s9 = sshll.u32 %s202_s8, 4  ;;  %s1838_s11 = smov 64   ;;  %s211_s9 = int_to_ptr.vmem [resolvable:$true] %s210_s9 }
  0x11   : > { %s1839_s12 = smov 4   ;;  %p1347_p10 = scmp.ge.s32.totalorder %s1836_s20, 1 }
  0x12   : > { %1702 = dma.hbm_to_vmem [thread:$0]  (!%p1700_p9), %s209_s7, 2304, %s211_s9, %s199_s10, %s1838_s11, %s1838_s11, %s1839_s12  }
  0x13   : > { %p218_p11 = scmp.lt.s32.totalorder %s1836_s20, 3 }
  0x15   : > { %p219_p12 = pnand %p1347_p10, %p218_p11 }
  0x16   : > { %s224_s13 = sand.u32 (!%p219_p12), 1, %s1820_s16  }
  0x17   : > { %222 = sbr.rel (%p219_p12) target bundleno = 390 (0x186), region = 36  ;;  %s225_s15 = scalar_lea.sflag (!%p219_p12), [#allocation3], %s224_s13 }
  0x18   : > { %s1696_s14 = smul.u32 (!%p219_p12), 144, %s224_s13 }
  0x1a   : > { %s1920_s21 = scalar_lea.vmem (!%p219_p12), [#allocation2], %s1696_s14 }
  0x1c   : > { %1811 = dma.done.wait (%p1904_p7), %s225_s15, 2304  }
  0x1d   : > { %1813 = vsyncadd (%p1904_p7), %s225_s15, 4294964992  ;;  %v1645_v0 = vld [vmem:[%s2263_s1 + $0x78] sm:$0xff]  ;;  %v1644_v3 = vld [vmem:[%s2263_s1 + $0x70] sm:$0xff]  ;;  %p277_p13 = scmp.lt.s32.totalorder %s1828_s18, 1  ;;  %vm1178_vm0 = vcmask 388096  }
  0x1e   : > { %v1636_v1 = vld [vmem:[%s2263_s1 + $0x38] sm:$0xff]  ;;  %496 = vmatpush.bf16.msra.mxu0 %v1645_v0  ;;  %1670 = vmatpush.bf16.msra.mxu3 %v1645_v0  ;;  %v1635_v4 = vld [vmem:[%s2263_s1 + $0x30] sm:$0xff]  ;;  %v1643_v6 = vld [vmem:[%s2263_s1 + $0x68] sm:$0xff] }
  0x1f   : > { %v1935_v2 = vld [vmem:[%s2263_s1 + $0xb8] sm:$0xff]  ;;  %639 = vmatpush.bf16.msra.mxu1 %v1636_v1  ;;  %v1947_v5 = vld [vmem:[%s2263_s1 + $0xb0] sm:$0xff]  ;;  %v1634_v7 = vld [vmem:[%s2263_s1 + $0x28] sm:$0xff]  ;;  %s2276_s18 = smov (!%p277_p13, %s1828_s18), 1 }
  0x20   : > { %921 = vmatpush.bf16.msra.mxu2 %v1935_v2  ;;  %v1959_v8 = vld [vmem:[%s2263_s1 + $0xa8] sm:$0xff]  ;;  %v1642_v9 = vld [vmem:[%s2263_s1 + $0x60] sm:$0xff]  ;;  %v1641_v12 = vld [vmem:[%s2263_s1 + $0x58] sm:$0xff]  ;;  %s1612_s14 = sshll.u32 %s2276_s18, 7 }
  0x21   : > { %v1633_v10 = vld [vmem:[%s2263_s1 + $0x20] sm:$0xff]  ;;  %v1632_v13 = vld [vmem:[%s2263_s1 + $0x18] sm:$0xff]  ;;  %v1640_v15 = vld [vmem:[%s2263_s1 + $0x50] sm:$0xff]  ;;  %s2063_s24 = scalar_lea.vmem %s2266_s4, %s1612_s14 }
  0x22   : > { %497 = vmatpush.bf16.msra.mxu0 %v1644_v3  ;;  %1671 = vmatpush.bf16.msra.mxu3 %v1644_v3  ;;  %v1971_v11 = vld [vmem:[%s2263_s1 + $0xa0] sm:$0xff]  ;;  %v1665_v14 = vld [vmem:[%s2263_s1 + $0x98] sm:$0xff]  ;;  %v1631_v16 = vld [vmem:[%s2263_s1 + $0x10] sm:$0xff] }
  0x23   : > { %640 = vmatpush.bf16.msra.mxu1 %v1635_v4  ;;  %v1664_v17 = vld [vmem:[%s2263_s1 + $0x90] sm:$0xff]  ;;  %v1639_v18 = vld [vmem:[%s2263_s1 + $0x48] sm:$0xff]  ;;  %v1638_v21 = vld [vmem:[%s2263_s1 + $0x40] sm:$0xff] }
  0x24   : > { %922 = vmatpush.bf16.msra.mxu2 %v1947_v5  ;;  %v1630_v19 = vld [vmem:[%s2263_s1 + $0x8] sm:$0xff]  ;;  %v1629_v22 = vld [vmem:[%s2263_s1] sm:$0xff] }
  0x25   : > { %v1663_v20 = vld [vmem:[%s2263_s1 + $0x88] sm:$0xff]  ;;  %v1662_v23 = vld [vmem:[%s2263_s1 + $0x80] sm:$0xff] }
  0x26   : > { %498 = vmatpush.bf16.msra.mxu0 %v1643_v6  ;;  %1672 = vmatpush.bf16.msra.mxu3 %v1643_v6  ;;  %v1614_v24 = vld [vmem:[%s1920_s21 + $0x8] sm:$0xff]  ;;  %v1613_v26 = vld [vmem:[%s1920_s21] sm:$0xff]  ;;  %v1646_v27 = vld [vmem:[%s1920_s21 + $0x10] sm:$0xff] }
  0x27   : > { %641 = vmatpush.bf16.msra.mxu1 %v1634_v7  ;;  %v1626_v25 = vld [vmem:[%s1920_s21 + $0x68] sm:$0xff]  ;;  %v1615_v28 = vld [vmem:[%s1920_s21 + $0x10] sm:$0xff]  ;;  %v1647_v30 = vld [vmem:[%s1920_s21 + $0x18] sm:$0xff] }
  0x28   : > { %923 = vmatpush.bf16.msra.mxu2 %v1959_v8  ;;  %v1627_v29 = vld [vmem:[%s1920_s21 + $0x70] sm:$0xff]  ;;  %v1616_v31 = vld [vmem:[%s1920_s21 + $0x18] sm:$0xff]  ;;  %v1648_v33 = vld [vmem:[%s1920_s21 + $0x20] sm:$0xff] }
  0x29   : > { %v1628_v32 = vld [vmem:[%s1920_s21 + $0x78] sm:$0xff]  ;;  %v1617_v34 = vld [vmem:[%s1920_s21 + $0x20] sm:$0xff]  ;;  %v1649_v36 = vld [vmem:[%s1920_s21 + $0x28] sm:$0xff] }
  0x2a   : > { %499 = vmatpush.bf16.msra.mxu0 %v1642_v9  ;;  %1673 = vmatpush.bf16.msra.mxu3 %v1642_v9  ;;  %v1637_v35 = vld [vmem:[%s1920_s21 + $0x80] sm:$0xff]  ;;  %v1618_v37 = vld [vmem:[%s1920_s21 + $0x28] sm:$0xff]  ;;  %v1650_v39 = vld [vmem:[%s1920_s21 + $0x30] sm:$0xff] }
  0x2b   : > { %642 = vmatpush.bf16.msra.mxu1 %v1633_v10  ;;  %v2029_v38 = vld [vmem:[%s1920_s21 + $0x60] sm:$0xff]  ;;  %v1619_v40 = vld [vmem:[%s1920_s21 + $0x30] sm:$0xff]  ;;  %v1651_v41 = vld [vmem:[%s1920_s21 + $0x38] sm:$0xff] }
  0x2c   : > { %924 = vmatpush.bf16.msra.mxu2 %v1971_v11  ;;  %v1620_v42 = vld [vmem:[%s1920_s21 + $0x38] sm:$0xff]  ;;  %v1652_v43 = vld [vmem:[%s1920_s21 + $0x40] sm:$0xff]  ;;  %v1653_v45 = vld [vmem:[%s1920_s21 + $0x48] sm:$0xff] }
  0x2d   : > { %v1621_v44 = vld [vmem:[%s1920_s21 + $0x40] sm:$0xff]  ;;  %v1622_v46 = vld [vmem:[%s1920_s21 + $0x48] sm:$0xff]  ;;  %v1658_v47 = vld [vmem:[%s1920_s21 + $0x70] sm:$0xff] }
  0x2e   : > { %500 = vmatpush.bf16.msra.mxu0 %v1641_v12  ;;  %1674 = vmatpush.bf16.msra.mxu3 %v1641_v12  ;;  %v1654_v49 = vld [vmem:[%s1920_s21 + $0x50] sm:$0xff]  ;;  %v1655_v6 = vld [vmem:[%s1920_s21 + $0x58] sm:$0xff] }
  0x2f   : > { %643 = vmatpush.bf16.msra.mxu1 %v1632_v13  ;;  %v2048_v53 = vld [vmem:[%s2264_s2] ss:$0 sm:$0xff] }
  0x30   : > { %925 = vmatpush.bf16.msra.mxu2 %v1665_v14  ;;  %v2054_v56 = vld [vmem:[%s2265_s3] ss:$0 sm:$0xff] }
  0x32   : > { %501 = vmatpush.bf16.msra.mxu0 %v1640_v15  ;;  %1675 = vmatpush.bf16.msra.mxu3 %v1640_v15 }
  0x33   : > { %644 = vmatpush.bf16.msra.mxu1 %v1631_v16 }
  0x34   : > { %926 = vmatpush.bf16.msra.mxu2 %v1664_v17 }
  0x36   : > { %502 = vmatpush.bf16.msra.mxu0 %v1639_v18  ;;  %1676 = vmatpush.bf16.msra.mxu3 %v1639_v18 }
  0x37   : > { %645 = vmatpush.bf16.msra.mxu1 %v1630_v19 }
  0x38   : > { %927 = vmatpush.bf16.msra.mxu2 %v1663_v20 }
  0x3a   : > { %503 = vmatpush.bf16.msra.mxu0 %v1638_v21  ;;  %1677 = vmatpush.bf16.msra.mxu3 %v1638_v21 }
  0x3b   : > { %646 = vmatpush.bf16.msra.mxu1 %v1629_v22 }
  0x3c   : > { %928 = vmatpush.bf16.msra.mxu2 %v1662_v23 }
  0x3d   : > { %504 = vmatmul.bf16.vlgmr.msra.gmra.mxu0 %v1614_v24  ;;  %564 = vmatmul.bf16.vlgmr.msra.gmra.mxu3 %v1626_v25 }
  0x3e   : > { %1678 = vmatpush.bf16.msrb.mxu3 %v1636_v1  ;;  %647 = vmatmul.bf16.vlgmr.msra.gmra.mxu1 %v1613_v26  ;;  %v1623_v1 = vld [vmem:[%s1920_s21 + $0x50] sm:$0xff] }
  0x3f   : > { %929 = vmatmul.bf16.vlgmr.msra.gmra.mxu2 %v1646_v27 }
  0x42   : > { %1679 = vmatpush.bf16.msrb.mxu3 %v1635_v4 }
  0x46   : > { %1680 = vmatpush.bf16.msrb.mxu3 %v1634_v7 }
  0x4a   : > { %1681 = vmatpush.bf16.msrb.mxu3 %v1633_v10 }
  0x4d   : > { %509 = vmatmul.bf16.gmra.mxu0 %v1615_v28  ;;  %569 = vmatmul.bf16.gmra.mxu3 %v1627_v29 }
  0x4e   : > { %1682 = vmatpush.bf16.msrb.mxu3 %v1632_v13  ;;  %652 = vmatmul.bf16.gmra.mxu1 %v1614_v24  ;;  %v1624_v24 = vld [vmem:[%s1920_s21 + $0x58] sm:$0xff] }
  0x4f   : > { %934 = vmatmul.bf16.gmra.mxu2 %v1647_v30 }
  0x52   : > { %1683 = vmatpush.bf16.msrb.mxu3 %v1631_v16 }
  0x56   : > { %1684 = vmatpush.bf16.msrb.mxu3 %v1630_v19 }
  0x5a   : > { %1685 = vmatpush.bf16.msrb.mxu3 %v1629_v22 }
  0x5d   : > { %514 = vmatmul.bf16.gmra.mxu0 %v1616_v31  ;;  %574 = vmatmul.bf16.gmra.mxu3 %v1628_v32 }
  0x5e   : > { %1686 = vmatpush.bf16.msra.mxu3 %v1935_v2  ;;  %657 = vmatmul.bf16.gmra.mxu1 %v1615_v28  ;;  %v1659_v2 = vld [vmem:[%s1920_s21 + $0x78] sm:$0xff] }
  0x5f   : > { %939 = vmatmul.bf16.gmra.mxu2 %v1648_v33 }
  0x62   : > { %1687 = vmatpush.bf16.msra.mxu3 %v1947_v5 }
  0x66   : > { %1688 = vmatpush.bf16.msra.mxu3 %v1959_v8 }
  0x6a   : > { %1689 = vmatpush.bf16.msra.mxu3 %v1971_v11 }
  0x6d   : > { %519 = vmatmul.bf16.gmra.mxu0 %v1617_v34  ;;  %579 = vmatmul.bf16.gmra.mxu3 %v1637_v35 }
  0x6e   : > { %1690 = vmatpush.bf16.msra.mxu3 %v1665_v14  ;;  %662 = vmatmul.bf16.gmra.mxu1 %v1616_v31 }
  0x6f   : > { %944 = vmatmul.bf16.gmra.mxu2 %v1649_v36 }
  0x72   : > { %1691 = vmatpush.bf16.msra.mxu3 %v1664_v17 }
  0x76   : > { %1692 = vmatpush.bf16.msra.mxu3 %v1663_v20 }
  0x7a   : > { %1693 = vmatpush.bf16.msra.mxu3 %v1662_v23 }
  0x7d   : > { %524 = vmatmul.bf16.gmra.mxu0 %v1618_v37  ;;  %707 = vmatmul.bf16.vlgmr.msrb.gmra.mxu3 %v2029_v38 }
  0x7e   : > { %667 = vmatmul.bf16.gmra.mxu1 %v1617_v34 }
  0x7f   : > { %949 = vmatmul.bf16.gmra.mxu2 %v1650_v39 }
  0x8d   : > { %529 = vmatmul.bf16.gmra.mxu0 %v1619_v40  ;;  %712 = vmatmul.bf16.gmra.mxu3 %v1626_v25  ;;  %v1660_v25 = vld [vmem:[%s1920_s21 + $0x80] sm:$0xff] }
  0x8e   : > { %672 = vmatmul.bf16.gmra.mxu1 %v1618_v37 }
  0x8f   : > { %954 = vmatmul.bf16.gmra.mxu2 %v1651_v41 }
  0x9d   : > { %534 = vmatmul.bf16.gmra.mxu0 %v1620_v42  ;;  %717 = vmatmul.bf16.gmra.mxu3 %v1627_v29  ;;  %v1656_v29 = vld [vmem:[%s1920_s21 + $0x60] sm:$0xff] }
  0x9e   : > { %677 = vmatmul.bf16.gmra.mxu1 %v1619_v40 }
  0x9f   : > { %959 = vmatmul.bf16.gmra.mxu2 %v1652_v43 }
  0xad   : > { %539 = vmatmul.bf16.gmra.mxu0 %v1621_v44  ;;  %722 = vmatmul.bf16.gmra.mxu3 %v1628_v32 }
  0xae   : > { %682 = vmatmul.bf16.gmra.mxu1 %v1620_v42 }
  0xaf   : > { %964 = vmatmul.bf16.gmra.mxu2 %v1653_v45 }
  0xba   : > { %v505_v48 = vpop.f32.mrf.mxu0 }
  0xbb   : > { %v648_v50 = vpop.f32.mrf.mxu1 }
  0xbc   : > { %v649_v51 = vadd.f32 %v648_v50, %v505_v48  ;;  %v1661_v48 = vld [vmem:[%s1920_s21 + $0x88] sm:$0xff] }
  0xbd   : > { %544 = vmatmul.bf16.gmra.mxu0 %v1622_v46  ;;  %989 = vmatmul.bf16.vlgmr.msra.gmra.mxu3 %v1658_v47 }
  0xbe   : > { %687 = vmatmul.bf16.gmra.mxu1 %v1621_v44 }
  0xbf   : > { %969 = vmatmul.bf16.gmra.mxu2 %v1654_v49 }
  0xc0   : > { %v2043_v52 = vpop.f32.mrf.mxu3 }
  0xc2   : > { %v930_v54 = vpop.f32.mrf.mxu2  ;;  %v507_v57 = vpop.f32.mrf.mxu0 }
  0xc3   : > { %v1010_v55 = vadd.f32 %v930_v54, %v649_v51  ;;  %v650_v58 = vpop.f32.mrf.mxu1  ;;  %v1657_v54 = vld [vmem:[%s1920_s21 + $0x68] sm:$0xff] }
  0xc4   : > { %v651_v62 = vadd.f32 %v650_v58, %v507_v57 }
  0xc5   : > { %v1046_v59 = vmul.f32 %v2048_v53, %v1010_v55 }
  0xc7   : > { %v1082_v60 = vadd.f32 %v2054_v56, %v1046_v59 }
  0xc8   : > { %v2058_v63 = vpop.f32.mrf.mxu3 }
  0xc9   : > { %v1114_v61 = vmax.f32 %v1082_v60, 0.0 }
  0xca   : > { %v932_v0 = vpop.f32.mrf.mxu2  ;;  %v510_v5 = vpop.f32.mrf.mxu0 }
  0xcb   : > { %v1146_v3 = vpack.c.bf16 %v1114_v61, %v1114_v61  ;;  %v1011_v4 = vadd.f32 %v932_v0, %v651_v62  ;;  %v653_v7 = vpop.f32.mrf.mxu1 }
  0xcc   : > { %v654_v10 = vadd.f32 %v653_v7, %v510_v5 }
  0xcd   : > { %1179 = vst.msk [vmem:[%s2063_s24] sm:$0xf] %vm1178_vm0, %v1146_v3  ;;  %v1047_v8 = vmul.f32 %v2048_v53, %v1011_v4  ;;  %549 = vmatmul.bf16.gmra.mxu0 %v1623_v1  ;;  %994 = vmatmul.bf16.gmra.mxu3 %v1659_v2 }
  0xce   : > { %692 = vmatmul.bf16.gmra.mxu1 %v1622_v46 }
  0xcf   : > { %v1083_v9 = vadd.f32 %v2054_v56, %v1047_v8  ;;  %974 = vmatmul.bf16.gmra.mxu2 %v1655_v6 }
  0xd0   : > { %v2072_v12 = vpop.f32.mrf.mxu3 }
  0xd1   : > { %v1115_v11 = vmax.f32 %v1083_v9, 0.0 }
  0xd2   : > { %v935_v13 = vpop.f32.mrf.mxu2  ;;  %v512_v16 = vpop.f32.mrf.mxu0 }
  0xd3   : > { %v1147_v14 = vpack.c.bf16 %v1115_v11, %v1115_v11  ;;  %v1012_v15 = vadd.f32 %v935_v13, %v654_v10  ;;  %v655_v17 = vpop.f32.mrf.mxu1 }
  0xd4   : > { %v656_v21 = vadd.f32 %v655_v17, %v512_v16 }
  0xd5   : > { %1180 = vst.msk [vmem:[%s2063_s24 + $0x4] sm:$0xf] %vm1178_vm0, %v1147_v14  ;;  %v1048_v18 = vmul.f32 %v2048_v53, %v1012_v15 }
  0xd7   : > { %v1084_v19 = vadd.f32 %v2054_v56, %v1048_v18 }
  0xd8   : > { %v2078_v22 = vpop.f32.mrf.mxu3 }
  0xd9   : > { %v1116_v20 = vmax.f32 %v1084_v19, 0.0 }
  0xda   : > { %v937_v23 = vpop.f32.mrf.mxu2  ;;  %v515_v28 = vpop.f32.mrf.mxu0 }
  0xdb   : > { %v1148_v26 = vpack.c.bf16 %v1116_v20, %v1116_v20  ;;  %v1013_v27 = vadd.f32 %v937_v23, %v656_v21  ;;  %v658_v30 = vpop.f32.mrf.mxu1 }
  0xdc   : > { %v659_v33 = vadd.f32 %v658_v30, %v515_v28 }
  0xdd   : > { %1181 = vst.msk [vmem:[%s2063_s24 + $0x8] sm:$0xf] %vm1178_vm0, %v1148_v26  ;;  %v1049_v31 = vmul.f32 %v2048_v53, %v1013_v27  ;;  %554 = vmatmul.bf16.gmra.mxu0 %v1624_v24  ;;  %999 = vmatmul.bf16.gmra.mxu3 %v1660_v25 }
  0xde   : > { %697 = vmatmul.bf16.gmra.mxu1 %v1623_v1 }
  0xdf   : > { %v1085_v32 = vadd.f32 %v2054_v56, %v1049_v31  ;;  %979 = vmatmul.bf16.gmra.mxu2 %v1656_v29 }
  0xe0   : > { %v2087_v35 = vpop.f32.mrf.mxu3 }
  0xe1   : > { %v1117_v34 = vmax.f32 %v1085_v32, 0.0 }
  0xe2   : > { %v940_v36 = vpop.f32.mrf.mxu2  ;;  %v517_v40 = vpop.f32.mrf.mxu0 }
  0xe3   : > { %v1149_v37 = vpack.c.bf16 %v1117_v34, %v1117_v34  ;;  %v1014_v39 = vadd.f32 %v940_v36, %v659_v33  ;;  %v660_v41 = vpop.f32.mrf.mxu1 }
  0xe4   : > { %v661_v45 = vadd.f32 %v660_v41, %v517_v40 }
  0xe5   : > { %1182 = vst.msk [vmem:[%s2063_s24 + $0xc] sm:$0xf] %vm1178_vm0, %v1149_v37  ;;  %v1050_v42 = vmul.f32 %v2048_v53, %v1014_v39 }
  0xe7   : > { %v1086_v43 = vadd.f32 %v2054_v56, %v1050_v42 }
  0xe8   : > { %v2093_v46 = vpop.f32.mrf.mxu3 }
  0xe9   : > { %v1118_v44 = vmax.f32 %v1086_v43, 0.0 }
  0xea   : > { %v942_v47 = vpop.f32.mrf.mxu2  ;;  %v520_v51 = vpop.f32.mrf.mxu0 }
  0xeb   : > { %v1150_v49 = vpack.c.bf16 %v1118_v44, %v1118_v44  ;;  %v1015_v50 = vadd.f32 %v942_v47, %v661_v45  ;;  %v663_v55 = vpop.f32.mrf.mxu1 }
  0xec   : > { %v664_v59 = vadd.f32 %v663_v55, %v520_v51 }
  0xed   : > { %1183 = vst.msk [vmem:[%s2063_s24 + $0x10] sm:$0xf] %vm1178_vm0, %v1150_v49  ;;  %v1051_v57 = vmul.f32 %v2048_v53, %v1015_v50  ;;  %559 = vmatmul.bf16.gmra.mxu0 %v2029_v38  ;;  %1004 = vmatmul.bf16.gmra.mxu3 %v1661_v48 }
  0xee   : > { %702 = vmatmul.bf16.gmra.mxu1 %v1624_v24 }
  0xef   : > { %v1087_v58 = vadd.f32 %v2054_v56, %v1051_v57  ;;  %984 = vmatmul.bf16.gmra.mxu2 %v1657_v54 }
  0xf0   : > { %v2102_v61 = vpop.f32.mrf.mxu3 }
  0xf1   : > { %v1119_v60 = vmax.f32 %v1087_v58, 0.0 }
  0xf2   : > { %v945_v62 = vpop.f32.mrf.mxu2  ;;  %v522_v2 = vpop.f32.mrf.mxu0 }
  0xf3   : > { %v1151_v0 = vpack.c.bf16 %v1119_v60, %v1119_v60  ;;  %v1016_v1 = vadd.f32 %v945_v62, %v664_v59  ;;  %v665_v3 = vpop.f32.mrf.mxu1 }
  0xf4   : > { %v666_v6 = vadd.f32 %v665_v3, %v522_v2 }
  0xf5   : > { %1184 = vst.msk [vmem:[%s2063_s24 + $0x14] sm:$0xf] %vm1178_vm0, %v1151_v0  ;;  %v1052_v4 = vmul.f32 %v2048_v53, %v1016_v1 }
  0xf7   : > { %v1088_v38 = vadd.f32 %v2054_v56, %v1052_v4 }
  0xf8   : > { %v2108_v7 = vpop.f32.mrf.mxu3 }
  0xf9   : > { %v1120_v5 = vmax.f32 %v1088_v38, 0.0 }
  0xfa   : > { %v947_v8 = vpop.f32.mrf.mxu2  ;;  %v525_v11 = vpop.f32.mrf.mxu0 }
  0xfb   : > { %v1152_v9 = vpack.c.bf16 %v1120_v5, %v1120_v5  ;;  %v1017_v10 = vadd.f32 %v947_v8, %v666_v6  ;;  %v668_v13 = vpop.f32.mrf.mxu1 }
  0xfc   : > { %v669_v16 = vadd.f32 %v668_v13, %v525_v11 }
  0xfd   : > { %1185 = vst.msk [vmem:[%s2063_s24 + $0x18] sm:$0xf] %vm1178_vm0, %v1152_v9  ;;  %v1053_v14 = vmul.f32 %v2048_v53, %v1017_v10 }
  0xff   : > { %v1089_v15 = vadd.f32 %v2054_v56, %v1053_v14 }
 0x100   : > { %v2114_v18 = vpop.f32.mrf.mxu3 }
 0x101   : > { %v1121_v17 = vmax.f32 %v1089_v15, 0.0 }
 0x102   : > { %v950_v19 = vpop.f32.mrf.mxu2  ;;  %v527_v23 = vpop.f32.mrf.mxu0 }
 0x103   : > { %v1153_v20 = vpack.c.bf16 %v1121_v17, %v1121_v17  ;;  %v1018_v21 = vadd.f32 %v950_v19, %v669_v16  ;;  %v670_v24 = vpop.f32.mrf.mxu1 }
 0x104   : > { %v671_v28 = vadd.f32 %v670_v24, %v527_v23 }
 0x105   : > { %1186 = vst.msk [vmem:[%s2063_s24 + $0x1c] sm:$0xf] %vm1178_vm0, %v1153_v20  ;;  %v1054_v25 = vmul.f32 %v2048_v53, %v1018_v21 }
 0x107   : > { %v1090_v26 = vadd.f32 %v2054_v56, %v1054_v25 }
 0x108   : > { %v2120_v29 = vpop.f32.mrf.mxu3 }
 0x109   : > { %v1122_v27 = vmax.f32 %v1090_v26, 0.0 }
 0x10a   : > { %v952_v30 = vpop.f32.mrf.mxu2  ;;  %v530_v33 = vpop.f32.mrf.mxu0 }
 0x10b   : > { %v1154_v31 = vpack.c.bf16 %v1122_v27, %v1122_v27  ;;  %v1019_v32 = vadd.f32 %v952_v30, %v671_v28  ;;  %v673_v34 = vpop.f32.mrf.mxu1 }
 0x10c   : > { %v674_v39 = vadd.f32 %v673_v34, %v530_v33 }
 0x10d   : > { %1187 = vst.msk [vmem:[%s2063_s24 + $0x20] sm:$0xf] %vm1178_vm0, %v1154_v31  ;;  %v1055_v36 = vmul.f32 %v2048_v53, %v1019_v32 }
 0x10f   : > { %v1091_v37 = vadd.f32 %v2054_v56, %v1055_v36 }
 0x110   : > { %v2126_v41 = vpop.f32.mrf.mxu3 }
 0x111   : > { %v1123_v40 = vmax.f32 %v1091_v37, 0.0 }
 0x112   : > { %v955_v42 = vpop.f32.mrf.mxu2  ;;  %v532_v45 = vpop.f32.mrf.mxu0 }
 0x113   : > { %v1155_v43 = vpack.c.bf16 %v1123_v40, %v1123_v40  ;;  %v1020_v44 = vadd.f32 %v955_v42, %v674_v39  ;;  %v675_v47 = vpop.f32.mrf.mxu1 }
 0x114   : > { %v676_v51 = vadd.f32 %v675_v47, %v532_v45 }
 0x115   : > { %1188 = vst.msk [vmem:[%s2063_s24 + $0x24] sm:$0xf] %vm1178_vm0, %v1155_v43  ;;  %v1056_v48 = vmul.f32 %v2048_v53, %v1020_v44 }
 0x117   : > { %v1092_v49 = vadd.f32 %v2054_v56, %v1056_v48 }
 0x118   : > { %v2132_v54 = vpop.f32.mrf.mxu3 }
 0x119   : > { %v1124_v50 = vmax.f32 %v1092_v49, 0.0 }
 0x11a   : > { %v957_v55 = vpop.f32.mrf.mxu2  ;;  %v535_v59 = vpop.f32.mrf.mxu0 }
 0x11b   : > { %v1156_v57 = vpack.c.bf16 %v1124_v50, %v1124_v50  ;;  %v1021_v58 = vadd.f32 %v957_v55, %v676_v51  ;;  %v678_v60 = vpop.f32.mrf.mxu1  ;;  %v709_v50 = vadd.f32 %v2114_v18, %v2043_v52  ;;  %v711_v18 = vadd.f32 %v2120_v29, %v2058_v63 }
 0x11c   : > { %v679_v1 = vadd.f32 %v678_v60, %v535_v59 }
 0x11d   : > { %1189 = vst.msk [vmem:[%s2063_s24 + $0x28] sm:$0xf] %vm1178_vm0, %v1156_v57  ;;  %v1057_v62 = vmul.f32 %v2048_v53, %v1021_v58 }
 0x11f   : > { %v1093_v0 = vadd.f32 %v2054_v56, %v1057_v62 }
 0x120   : > { %v2138_v3 = vpop.f32.mrf.mxu3 }
 0x121   : > { %v1125_v2 = vmax.f32 %v1093_v0, 0.0 }
 0x122   : > { %v960_v4 = vpop.f32.mrf.mxu2  ;;  %v537_v6 = vpop.f32.mrf.mxu0 }
 0x123   : > { %v1157_v38 = vpack.c.bf16 %v1125_v2, %v1125_v2  ;;  %v1022_v5 = vadd.f32 %v960_v4, %v679_v1  ;;  %v680_v8 = vpop.f32.mrf.mxu1 }
 0x124   : > { %v681_v13 = vadd.f32 %v680_v8, %v537_v6 }
 0x125   : > { %1190 = vst.msk [vmem:[%s2063_s24 + $0x2c] sm:$0xf] %vm1178_vm0, %v1157_v38  ;;  %v1058_v9 = vmul.f32 %v2048_v53, %v1022_v5 }
 0x127   : > { %v1094_v10 = vadd.f32 %v2054_v56, %v1058_v9 }
 0x128   : > { %v2144_v14 = vpop.f32.mrf.mxu3 }
 0x129   : > { %v1126_v11 = vmax.f32 %v1094_v10, 0.0 }
 0x12a   : > { %v962_v15 = vpop.f32.mrf.mxu2  ;;  %v540_v19 = vpop.f32.mrf.mxu0 }
 0x12b   : > { %v1158_v16 = vpack.c.bf16 %v1126_v11, %v1126_v11  ;;  %v1023_v17 = vadd.f32 %v962_v15, %v681_v13  ;;  %v683_v20 = vpop.f32.mrf.mxu1 }
 0x12c   : > { %v684_v24 = vadd.f32 %v683_v20, %v540_v19 }
 0x12d   : > { %1191 = vst.msk [vmem:[%s2063_s24 + $0x30] sm:$0xf] %vm1178_vm0, %v1158_v16  ;;  %v1059_v21 = vmul.f32 %v2048_v53, %v1023_v17 }
 0x12f   : > { %v1095_v23 = vadd.f32 %v2054_v56, %v1059_v21 }
 0x130   : > { %v2150_v26 = vpop.f32.mrf.mxu3 }
 0x131   : > { %v1127_v25 = vmax.f32 %v1095_v23, 0.0  ;;  %v714_v23 = vadd.f32 %v2126_v41, %v2072_v12 }
 0x132   : > { %v965_v27 = vpop.f32.mrf.mxu2  ;;  %v542_v31 = vpop.f32.mrf.mxu0 }
 0x133   : > { %v1159_v28 = vpack.c.bf16 %v1127_v25, %v1127_v25  ;;  %v1024_v30 = vadd.f32 %v965_v27, %v684_v24  ;;  %v685_v32 = vpop.f32.mrf.mxu1 }
 0x134   : > { %v686_v37 = vadd.f32 %v685_v32, %v542_v31 }
 0x135   : > { %1192 = vst.msk [vmem:[%s2063_s24 + $0x34] sm:$0xf] %vm1178_vm0, %v1159_v28  ;;  %v1060_v33 = vmul.f32 %v2048_v53, %v1024_v30 }
 0x137   : > { %v1096_v34 = vadd.f32 %v2054_v56, %v1060_v33 }
 0x138   : > { %v2156_v39 = vpop.f32.mrf.mxu3 }
 0x139   : > { %v1128_v36 = vmax.f32 %v1096_v34, 0.0 }
 0x13a   : > { %v967_v40 = vpop.f32.mrf.mxu2  ;;  %v545_v44 = vpop.f32.mrf.mxu0 }
 0x13b   : > { %v1160_v42 = vpack.c.bf16 %v1128_v36, %v1128_v36  ;;  %v1025_v43 = vadd.f32 %v967_v40, %v686_v37  ;;  %v688_v45 = vpop.f32.mrf.mxu1 }
 0x13c   : > { %v689_v49 = vadd.f32 %v688_v45, %v545_v44 }
 0x13d   : > { %1193 = vst.msk [vmem:[%s2063_s24 + $0x38] sm:$0xf] %vm1178_vm0, %v1160_v42  ;;  %v1061_v47 = vmul.f32 %v2048_v53, %v1025_v43  ;;  %v716_v42 = vadd.f32 %v2132_v54, %v2078_v22 }
 0x13f   : > { %v1097_v48 = vadd.f32 %v2054_v56, %v1061_v47 }
 0x140   : > { %v990_v55 = vpop.f32.mrf.mxu3 }
 0x141   : > { %v1129_v51 = vmax.f32 %v1097_v48, 0.0  ;;  %v1034_v58 = vadd.f32 %v990_v55, %v709_v50 }
 0x142   : > { %v970_v57 = vpop.f32.mrf.mxu2  ;;  %v547_v62 = vpop.f32.mrf.mxu0 }
 0x143   : > { %v1161_v59 = vpack.c.bf16 %v1129_v51, %v1129_v51  ;;  %v1026_v60 = vadd.f32 %v970_v57, %v689_v49  ;;  %v1070_v0 = vmul.f32 %v2048_v53, %v1034_v58  ;;  %v690_v1 = vpop.f32.mrf.mxu1 }
 0x144   : > { %v691_v6 = vadd.f32 %v690_v1, %v547_v62 }
 0x145   : > { %1194 = vst.msk [vmem:[%s2063_s24 + $0x3c] sm:$0xf] %vm1178_vm0, %v1161_v59  ;;  %v1062_v2 = vmul.f32 %v2048_v53, %v1026_v60  ;;  %v1106_v4 = vadd.f32 %v2054_v56, %v1070_v0  ;;  %v719_v0 = vadd.f32 %v2138_v3, %v2087_v35 }
 0x147   : > { %v1098_v52 = vadd.f32 %v2054_v56, %v1062_v2  ;;  %v1138_v38 = vmax.f32 %v1106_v4, 0.0 }
 0x148   : > { %v992_v8 = vpop.f32.mrf.mxu3 }
 0x149   : > { %v1130_v5 = vmax.f32 %v1098_v52, 0.0  ;;  %v1170_v9 = vpack.c.bf16 %v1138_v38, %v1138_v38  ;;  %v1035_v11 = vadd.f32 %v992_v8, %v711_v18 }
 0x14a   : > { %v972_v10 = vpop.f32.mrf.mxu2  ;;  %v550_v16 = vpop.f32.mrf.mxu0 }
 0x14b   : > { %v1162_v13 = vpack.c.bf16 %v1130_v5, %v1130_v5  ;;  %v1027_v15 = vadd.f32 %v972_v10, %v691_v6  ;;  %1203 = vst.msk [vmem:[%s2063_s24 + $0x60] sm:$0xf] %vm1178_vm0, %v1170_v9  ;;  %v1071_v17 = vmul.f32 %v2048_v53, %v1035_v11  ;;  %v693_v19 = vpop.f32.mrf.mxu1 }
 0x14c   : > { %v694_v21 = vadd.f32 %v693_v19, %v550_v16 }
 0x14d   : > { %1195 = vst.msk [vmem:[%s2063_s24 + $0x40] sm:$0xf] %vm1178_vm0, %v1162_v13  ;;  %v1063_v63 = vmul.f32 %v2048_v53, %v1027_v15  ;;  %v1107_v29 = vadd.f32 %v2054_v56, %v1071_v17  ;;  %v721_v13 = vadd.f32 %v2144_v14, %v2093_v46 }
 0x14f   : > { %v1099_v20 = vadd.f32 %v2054_v56, %v1063_v63  ;;  %v1139_v24 = vmax.f32 %v1107_v29, 0.0 }
 0x150   : > { %v995_v27 = vpop.f32.mrf.mxu3 }
 0x151   : > { %v1131_v25 = vmax.f32 %v1099_v20, 0.0  ;;  %v1171_v28 = vpack.c.bf16 %v1139_v24, %v1139_v24  ;;  %v1036_v31 = vadd.f32 %v995_v27, %v714_v23 }
 0x152   : > { %v975_v30 = vpop.f32.mrf.mxu2  ;;  %v552_v34 = vpop.f32.mrf.mxu0 }
 0x153   : > { %v1163_v32 = vpack.c.bf16 %v1131_v25, %v1131_v25  ;;  %v1028_v33 = vadd.f32 %v975_v30, %v694_v21  ;;  %1204 = vst.msk [vmem:[%s2063_s24 + $0x64] sm:$0xf] %vm1178_vm0, %v1171_v28  ;;  %v1072_v36 = vmul.f32 %v2048_v53, %v1036_v31  ;;  %v695_v37 = vpop.f32.mrf.mxu1  ;;  %v724_v31 = vadd.f32 %v2150_v26, %v2102_v61 }
 0x154   : > { %v696_v45 = vadd.f32 %v695_v37, %v552_v34 }
 0x155   : > { %1196 = vst.msk [vmem:[%s2063_s24 + $0x44] sm:$0xf] %vm1178_vm0, %v1163_v32  ;;  %v1064_v40 = vmul.f32 %v2048_v53, %v1028_v33  ;;  %v1108_v12 = vadd.f32 %v2054_v56, %v1072_v36 }
 0x157   : > { %v1100_v41 = vadd.f32 %v2054_v56, %v1064_v40  ;;  %v1140_v43 = vmax.f32 %v1108_v12, 0.0 }
 0x158   : > { %v997_v47 = vpop.f32.mrf.mxu3 }
 0x159   : > { %v1132_v44 = vmax.f32 %v1100_v41, 0.0  ;;  %v1172_v48 = vpack.c.bf16 %v1140_v43, %v1140_v43  ;;  %v1037_v50 = vadd.f32 %v997_v47, %v716_v42  ;;  %v726_v47 = vadd.f32 %v2156_v39, %v2108_v7 }
 0x15a   : > { %v977_v49 = vpop.f32.mrf.mxu2  ;;  %v555_v57 = vpop.f32.mrf.mxu0 }
 0x15b   : > { %v1164_v51 = vpack.c.bf16 %v1132_v44, %v1132_v44  ;;  %v1029_v55 = vadd.f32 %v977_v49, %v696_v45  ;;  %1205 = vst.msk [vmem:[%s2063_s24 + $0x68] sm:$0xf] %vm1178_vm0, %v1172_v48  ;;  %v1073_v58 = vmul.f32 %v2048_v53, %v1037_v50  ;;  %v698_v59 = vpop.f32.mrf.mxu1 }
 0x15c   : > { %v699_v62 = vadd.f32 %v698_v59, %v555_v57 }
 0x15d   : > { %1197 = vst.msk [vmem:[%s2063_s24 + $0x48] sm:$0xf] %vm1178_vm0, %v1164_v51  ;;  %v1065_v22 = vmul.f32 %v2048_v53, %v1029_v55  ;;  %v1109_v54 = vadd.f32 %v2054_v56, %v1073_v58 }
 0x15f   : > { %v1101_v60 = vadd.f32 %v2054_v56, %v1065_v22  ;;  %v1141_v1 = vmax.f32 %v1109_v54, 0.0 }
 0x160   : > { %v1000_v4 = vpop.f32.mrf.mxu3 }
 0x161   : > { %v1133_v2 = vmax.f32 %v1101_v60, 0.0  ;;  %v1173_v52 = vpack.c.bf16 %v1141_v1, %v1141_v1  ;;  %v1038_v38 = vadd.f32 %v1000_v4, %v719_v0 }
 0x162   : > { %v980_v18 = vpop.f32.mrf.mxu2  ;;  %v557_v8 = vpop.f32.mrf.mxu0 }
 0x163   : > { %v1165_v5 = vpack.c.bf16 %v1133_v2, %v1133_v2  ;;  %v1030_v6 = vadd.f32 %v980_v18, %v699_v62  ;;  %1206 = vst.msk [vmem:[%s2063_s24 + $0x6c] sm:$0xf] %vm1178_vm0, %v1173_v52  ;;  %v1074_v9 = vmul.f32 %v2048_v53, %v1038_v38  ;;  %v700_v10 = vpop.f32.mrf.mxu1 }
 0x164   : > { %v701_v17 = vadd.f32 %v700_v10, %v557_v8 }
 0x165   : > { %1198 = vst.msk [vmem:[%s2063_s24 + $0x4c] sm:$0xf] %vm1178_vm0, %v1165_v5  ;;  %v1066_v11 = vmul.f32 %v2048_v53, %v1030_v6  ;;  %v1110_v35 = vadd.f32 %v2054_v56, %v1074_v9 }
 0x167   : > { %v1102_v3 = vadd.f32 %v2054_v56, %v1066_v11  ;;  %v1142_v15 = vmax.f32 %v1110_v35, 0.0 }
 0x168   : > { %v1002_v19 = vpop.f32.mrf.mxu3 }
 0x169   : > { %v1134_v16 = vmax.f32 %v1102_v3, 0.0  ;;  %v1174_v63 = vpack.c.bf16 %v1142_v15, %v1142_v15  ;;  %v1039_v20 = vadd.f32 %v1002_v19, %v721_v13 }
 0x16a   : > { %v982_v29 = vpop.f32.mrf.mxu2  ;;  %v560_v25 = vpop.f32.mrf.mxu0 }
 0x16b   : > { %v1166_v21 = vpack.c.bf16 %v1134_v16, %v1134_v16  ;;  %v1031_v23 = vadd.f32 %v982_v29, %v701_v17  ;;  %1207 = vst.msk [vmem:[%s2063_s24 + $0x70] sm:$0xf] %vm1178_vm0, %v1174_v63  ;;  %v1075_v24 = vmul.f32 %v2048_v53, %v1039_v20  ;;  %v703_v27 = vpop.f32.mrf.mxu1 }
 0x16c   : > { %v704_v30 = vadd.f32 %v703_v27, %v560_v25 }
 0x16d   : > { %1199 = vst.msk [vmem:[%s2063_s24 + $0x50] sm:$0xf] %vm1178_vm0, %v1166_v21  ;;  %v1067_v46 = vmul.f32 %v2048_v53, %v1031_v23  ;;  %v1111_v14 = vadd.f32 %v2054_v56, %v1075_v24 }
 0x16f   : > { %v1103_v28 = vadd.f32 %v2054_v56, %v1067_v46  ;;  %v1143_v32 = vmax.f32 %v1111_v14, 0.0 }
 0x170   : > { %v1005_v34 = vpop.f32.mrf.mxu3 }
 0x171   : > { %v1135_v33 = vmax.f32 %v1103_v28, 0.0  ;;  %v1175_v36 = vpack.c.bf16 %v1143_v32, %v1143_v32  ;;  %v1040_v40 = vadd.f32 %v1005_v34, %v724_v31 }
 0x172   : > { %v985_v37 = vpop.f32.mrf.mxu2  ;;  %v562_v61 = vpop.f32.mrf.mxu0 }
 0x173   : > { %v1167_v12 = vpack.c.bf16 %v1135_v33, %v1135_v33  ;;  %v1032_v41 = vadd.f32 %v985_v37, %v704_v30  ;;  %1208 = vst.msk [vmem:[%s2063_s24 + $0x74] sm:$0xf] %vm1178_vm0, %v1175_v36  ;;  %v1076_v42 = vmul.f32 %v2048_v53, %v1040_v40  ;;  %v705_v26 = vpop.f32.mrf.mxu1 }
 0x174   : > { %v706_v50 = vadd.f32 %v705_v26, %v562_v61 }
 0x175   : > { %1200 = vst.msk [vmem:[%s2063_s24 + $0x54] sm:$0xf] %vm1178_vm0, %v1167_v12  ;;  %v1068_v43 = vmul.f32 %v2048_v53, %v1032_v41  ;;  %v1112_v44 = vadd.f32 %v2054_v56, %v1076_v42 }
 0x177   : > { %v1104_v45 = vadd.f32 %v2054_v56, %v1068_v43  ;;  %v1144_v48 = vmax.f32 %v1112_v44, 0.0 }
 0x178   : > { %v1007_v51 = vpop.f32.mrf.mxu3 }
 0x179   : > { %v1136_v49 = vmax.f32 %v1104_v45, 0.0  ;;  %v1176_v55 = vpack.c.bf16 %v1144_v48, %v1144_v48  ;;  %v1041_v58 = vadd.f32 %v1007_v51, %v726_v47 }
 0x17a   : > { %v987_v57 = vpop.f32.mrf.mxu2 }
 0x17b   : > { %v1168_v59 = vpack.c.bf16 %v1136_v49, %v1136_v49  ;;  %v1033_v22 = vadd.f32 %v987_v57, %v706_v50  ;;  %1209 = vst.msk [vmem:[%s2063_s24 + $0x78] sm:$0xf] %vm1178_vm0, %v1176_v55  ;;  %v1077_v54 = vmul.f32 %v2048_v53, %v1041_v58 }
 0x17d   : > { %1201 = vst.msk [vmem:[%s2063_s24 + $0x58] sm:$0xf] %vm1178_vm0, %v1168_v59  ;;  %v1069_v60 = vmul.f32 %v2048_v53, %v1033_v22  ;;  %v1113_v7 = vadd.f32 %v2054_v56, %v1077_v54 }
 0x17f   : > { %v1105_v39 = vadd.f32 %v2054_v56, %v1069_v60  ;;  %v1145_v62 = vmax.f32 %v1113_v7, 0.0 }
 0x181   : > { %v1137_v0 = vmax.f32 %v1105_v39, 0.0  ;;  %v1177_v1 = vpack.c.bf16 %v1145_v62, %v1145_v62 }
 0x183   : > { %v1169_v2 = vpack.c.bf16 %v1137_v0, %v1137_v0  ;;  %1210 = vst.msk [vmem:[%s2063_s24 + $0x7c] sm:$0xf] %vm1178_vm0, %v1177_v1 }
 0x185   : > { %1202 = vst.msk [vmem:[%s2063_s24 + $0x5c] sm:$0xf] %vm1178_vm0, %v1169_v2 }
 0x186 PF: > { %s17_s20 = sadd.s32 1, %s1836_s20   ;;  %s2268_s15 = smov %s1820_s16 }
 0x187   : > { %p14_p0 = scmp.ge.s32.totalorder %s17_s20, 4   ;;  %s2269_s16 = smov %s1824_s17 }
 0x188   : > { %s2270_s17 = smov %s1910_s26  ;;  %s2271_s18 = smov %s1832_s19 }
 0x189   : > { %s2272_s19 = smov %s2274_s22  ;;  %16 = sbr.rel (!%p14_p0) target bundleno = 4 (0x4), region = 87 }
 0x18e   :  { %1238 = vsyncpa [#allocation3], 1 }
 0x18f   :  { %1240 = vsyncpa [#allocation3 + $0x1], 1 }

</bundles_post_ra>
